<compile_context>
chip_gen: v7x
topology: tpu7x:2x2x1
jax: 0.10.0
libtpu: 0.0.40
codegen_flags: <defaults>
</compile_context>

<pallas_src>
import functools

import jax
import jax.numpy as jnp
from jax import lax
from jax.experimental import pallas as pl
from jax.experimental.pallas import tpu as pltpu

_LANE = 128
_SUBLANE = 8


def _round_up(x, m):
    return (x + m - 1) // m * m


def _mlp_kernel(tok_ref, t_ref, b1_ref, w2_ref, b2_ref, o_ref, *, C, V):
    """Fused forward: one-hot gather -> fc1(+emb) fused table -> ReLU -> fc2."""
    tok = tok_ref[...]                                    # (B_pad, C) int32
    B_pad = tok.shape[0]
    CV = C * V

    # Fused-axis one-hot: column j = c*V + tok[:, c] is hot for each context
    # position c.  Single hoisted iota; C full-width compares on lane-dense
    # (B_pad, CV) vregs; OR-combined; cast once.
    j = lax.broadcasted_iota(jnp.int32, (B_pad, CV), 1)
    hot = None
    for c in range(C):                                    # static unroll, C small
        ids = lax.slice_in_dim(tok, c, c + 1, axis=1) + c * V   # (B_pad, 1)
        m = j == ids
        hot = m if hot is None else jnp.logical_or(hot, m)
    onehot = hot.astype(jnp.float32)                      # (B_pad, CV)

    # h = relu(onehot @ T + b1): embedding lookup + flatten + fc1 in ONE matmul
    # (T = emb @ W1^T per context slot, precomputed in prepare_params).
    h = jnp.dot(onehot, t_ref[...], preferred_element_type=jnp.float32)
    h = jnp.maximum(h + b1_ref[...], 0.0)                 # (B_pad, H_pad)

    # logits = h @ W2^T + b2  (W2^T pre-padded/transposed to (H_pad, V_pad)).
    out = jnp.dot(h, w2_ref[...], preferred_element_type=jnp.float32)
    o_ref[...] = (out + b2_ref[...]).astype(o_ref.dtype)  # (B_pad, V_pad)


def prepare_params(emb_table, w1, b1, w2, b2, context_length):
    """One-time parameter preparation (call once, OUTSIDE the per-call forward).

    - Fuses the embedding into fc1:  T[c*V + v, h] = sum_e emb[v,e] * W1[h, c*E+e].
      Valid whenever C*V*H_pad*4B fits VMEM (toy case: 8*32*128*4B = 128 KiB).
    - Pads H and V to lane multiples (128) so all in-kernel VPU ops and stores
      are unmasked; padded rows/cols are zero and contribute nothing.
    - Stores fc2 transposed as (H_pad, V_pad): both in-kernel dots contract
      lhs-last vs rhs-first dims (canonical MXU layout, no in-kernel transpose).
    """
    V, E = emb_table.shape
    H = w1.shape[0]
    C = context_length
    V_pad = _round_up(V, _LANE)
    H_pad = _round_up(H, _LANE)

    w1_r = w1.reshape(H, C, E)                                        # (H, C, E)
    fused = jnp.einsum('ve,hce->cvh', emb_table, w1_r,
                       preferred_element_type=jnp.float32)            # (C, V, H)
    fused = fused.reshape(C * V, H)

    table = jnp.zeros((C * V, H_pad), jnp.float32).at[:, :H].set(fused)
    b1_p = jnp.zeros((1, H_pad), jnp.float32).at[0, :H].set(b1)
    w2t = jnp.zeros((H_pad, V_pad), jnp.float32).at[:H, :V].set(w2.T)
    b2_p = jnp.zeros((1, V_pad), jnp.float32).at[0, :V].set(b2)

    return {
        "table": table,   # (C*V, H_pad)  fused emb@fc1 weight
        "b1": b1_p,       # (1, H_pad)
        "w2t": w2t,       # (H_pad, V_pad)
        "b2": b2_p,       # (1, V_pad)
    }


@functools.partial(jax.jit, static_argnames=("vocab_size",))
def mlp_forward(tokens, params, *, vocab_size):
    """Forward pass of CustomMLPForNextWord.

    tokens: (B, C) int32 token ids in [0, vocab_size)
    params: output of prepare_params (prepared once)
    returns: (B, vocab_size) float32 logits
    """
    B, C = tokens.shape
    CV, H_pad = params["table"].shape
    V = CV // C
    V_pad = params["w2t"].shape[1]
    B_pad = _round_up(B, _SUBLANE)

    # Minimal glue: pad batch to a sublane multiple (padded rows sliced off).
    tok_p = jnp.pad(tokens.astype(jnp.int32), ((0, B_pad - B), (0, 0)))

    kernel = functools.partial(_mlp_kernel, C=C, V=V)

    flops = 2 * B_pad * CV * H_pad + 2 * B_pad * H_pad * V_pad
    bytes_accessed = 4 * (tok_p.size + params["table"].size + params["b1"].size
                          + params["w2t"].size + params["b2"].size
                          + B_pad * V_pad)

    vmem = pl.BlockSpec(memory_space=pltpu.MemorySpace.VMEM)
    out = pl.pallas_call(
        kernel,
        out_shape=jax.ShapeDtypeStruct((B_pad, V_pad), jnp.float32),
        in_specs=[vmem] * 5,
        out_specs=vmem,
        cost_estimate=pl.CostEstimate(
            flops=flops, transcendentals=0, bytes_accessed=bytes_accessed),
        # Gridless single invocation: everything fits VMEM at these shapes.
        # TODO(synk): at realistic sizes add a "parallel" vocab-tile grid axis
        # (v7x has 2 TensorCores) and an explicit vmem_limit_bytes.
    )(tok_p, params["table"], params["b1"], params["w2t"], params["b2"])

    return out[:B, :vocab_size]


if __name__ == "__main__":
    # Small shapes consistent with the module's __init__.
    vocab_size = 32
    embedding_dim = 16
    hidden_size = 32
    context_length = 8
    batch = 2

    key = jax.random.PRNGKey(0)
    k_emb, k_w1, k_b1, k_w2, k_b2, k_tok = jax.random.split(key, 6)

    emb_table = jax.random.normal(k_emb, (vocab_size, embedding_dim), jnp.float32) * 0.1
    w1 = jax.random.normal(k_w1, (hidden_size, embedding_dim * context_length), jnp.float32) * 0.1
    b1 = jax.random.normal(k_b1, (hidden_size,), jnp.float32) * 0.1
    w2 = jax.random.normal(k_w2, (vocab_size, hidden_size), jnp.float32) * 0.1
    b2 = jax.random.normal(k_b2, (vocab_size,), jnp.float32) * 0.1

    tokens = jax.random.randint(k_tok, (batch, context_length), 0, vocab_size, jnp.int32)

    # One-time parameter preparation (outside the jitted forward).
    params = prepare_params(emb_table, w1, b1, w2, b2, context_length)

    logits = mlp_forward(tokens, params, vocab_size=vocab_size)
    logits = jax.block_until_ready(logits)

    # Pure-JAX reference (same math as the PyTorch module, no Pallas).
    # TODO(synk): activation_function is a constructor-passed callable in the
    # PyTorch module; this kernel hardwires ReLU.
    x_ref = jnp.take(emb_table, tokens, axis=0).reshape(batch, -1)
    h_ref = jnp.maximum(x_ref @ w1.T + b1, 0.0)
    ref = h_ref @ w2.T + b2

    assert logits.shape == (batch, vocab_size)
    assert jnp.allclose(logits, ref, atol=1e-5, rtol=1e-5), (
        float(jnp.max(jnp.abs(logits - ref))))

    print("KERNEL_OK")
</pallas_src>

<mosaic_0001>
module attributes {stable_mosaic.version = 11 : i64} {
  func.func @_mlp_kernel(%arg0: memref<8x8xi32, #tpu.memory_space<vmem>>, %arg1: memref<256x128xf32, #tpu.memory_space<vmem>>, %arg2: memref<1x128xf32, #tpu.memory_space<vmem>>, %arg3: memref<128x128xf32, #tpu.memory_space<vmem>>, %arg4: memref<1x128xf32, #tpu.memory_space<vmem>>, %arg5: memref<8x128xf32, #tpu.memory_space<vmem>>) attributes {dimension_semantics = [], scalar_prefetch = 0 : i64, scratch_operands = 0 : i64, tpu.core_type = #tpu.core_type<tc>} {
    %c0 = arith.constant 0 : index
    %c0_0 = arith.constant 0 : index
    %0 = vector.load %arg0[%c0, %c0_0] : memref<8x8xi32, #tpu.memory_space<vmem>>, vector<8x8xi32>
    %1 = tpu.iota {dimensions = array<i32: 1>} : vector<8x256xi32>
    %2 = vector.extract_strided_slice %0 {offsets = [0, 0], sizes = [8, 1], strides = [1, 1]} : vector<8x8xi32> to vector<8x1xi32>
    %c0_i32 = arith.constant 0 : i32
    %3 = vector.broadcast %c0_i32 : i32 to vector<8x1xi32>
    %4 = arith.addi %2, %3 : vector<8x1xi32>
    %5 = vector.broadcast %4 : vector<8x1xi32> to vector<8x256xi32>
    %6 = arith.cmpi eq, %1, %5 : vector<8x256xi32>
    %7 = vector.extract_strided_slice %0 {offsets = [0, 1], sizes = [8, 1], strides = [1, 1]} : vector<8x8xi32> to vector<8x1xi32>
    %c32_i32 = arith.constant 32 : i32
    %8 = vector.broadcast %c32_i32 : i32 to vector<8x1xi32>
    %9 = arith.addi %7, %8 : vector<8x1xi32>
    %10 = vector.broadcast %9 : vector<8x1xi32> to vector<8x256xi32>
    %11 = arith.cmpi eq, %1, %10 : vector<8x256xi32>
    %12 = arith.ori %6, %11 : vector<8x256xi1>
    %13 = vector.extract_strided_slice %0 {offsets = [0, 2], sizes = [8, 1], strides = [1, 1]} : vector<8x8xi32> to vector<8x1xi32>
    %c64_i32 = arith.constant 64 : i32
    %14 = vector.broadcast %c64_i32 : i32 to vector<8x1xi32>
    %15 = arith.addi %13, %14 : vector<8x1xi32>
    %16 = vector.broadcast %15 : vector<8x1xi32> to vector<8x256xi32>
    %17 = arith.cmpi eq, %1, %16 : vector<8x256xi32>
    %18 = arith.ori %12, %17 : vector<8x256xi1>
    %19 = vector.extract_strided_slice %0 {offsets = [0, 3], sizes = [8, 1], strides = [1, 1]} : vector<8x8xi32> to vector<8x1xi32>
    %c96_i32 = arith.constant 96 : i32
    %20 = vector.broadcast %c96_i32 : i32 to vector<8x1xi32>
    %21 = arith.addi %19, %20 : vector<8x1xi32>
    %22 = vector.broadcast %21 : vector<8x1xi32> to vector<8x256xi32>
    %23 = arith.cmpi eq, %1, %22 : vector<8x256xi32>
    %24 = arith.ori %18, %23 : vector<8x256xi1>
    %25 = vector.extract_strided_slice %0 {offsets = [0, 4], sizes = [8, 1], strides = [1, 1]} : vector<8x8xi32> to vector<8x1xi32>
    %c128_i32 = arith.constant 128 : i32
    %26 = vector.broadcast %c128_i32 : i32 to vector<8x1xi32>
    %27 = arith.addi %25, %26 : vector<8x1xi32>
    %28 = vector.broadcast %27 : vector<8x1xi32> to vector<8x256xi32>
    %29 = arith.cmpi eq, %1, %28 : vector<8x256xi32>
    %30 = arith.ori %24, %29 : vector<8x256xi1>
    %31 = vector.extract_strided_slice %0 {offsets = [0, 5], sizes = [8, 1], strides = [1, 1]} : vector<8x8xi32> to vector<8x1xi32>
    %c160_i32 = arith.constant 160 : i32
    %32 = vector.broadcast %c160_i32 : i32 to vector<8x1xi32>
    %33 = arith.addi %31, %32 : vector<8x1xi32>
    %34 = vector.broadcast %33 : vector<8x1xi32> to vector<8x256xi32>
    %35 = arith.cmpi eq, %1, %34 : vector<8x256xi32>
    %36 = arith.ori %30, %35 : vector<8x256xi1>
    %37 = vector.extract_strided_slice %0 {offsets = [0, 6], sizes = [8, 1], strides = [1, 1]} : vector<8x8xi32> to vector<8x1xi32>
    %c192_i32 = arith.constant 192 : i32
    %38 = vector.broadcast %c192_i32 : i32 to vector<8x1xi32>
    %39 = arith.addi %37, %38 : vector<8x1xi32>
    %40 = vector.broadcast %39 : vector<8x1xi32> to vector<8x256xi32>
    %41 = arith.cmpi eq, %1, %40 : vector<8x256xi32>
    %42 = arith.ori %36, %41 : vector<8x256xi1>
    %43 = vector.extract_strided_slice %0 {offsets = [0, 7], sizes = [8, 1], strides = [1, 1]} : vector<8x8xi32> to vector<8x1xi32>
    %c224_i32 = arith.constant 224 : i32
    %44 = vector.broadcast %c224_i32 : i32 to vector<8x1xi32>
    %45 = arith.addi %43, %44 : vector<8x1xi32>
    %46 = vector.broadcast %45 : vector<8x1xi32> to vector<8x256xi32>
    %47 = arith.cmpi eq, %1, %46 : vector<8x256xi32>
    %48 = arith.ori %42, %47 : vector<8x256xi1>
    %49 = arith.extui %48 : vector<8x256xi1> to vector<8x256xi32>
    %50 = arith.sitofp %49 : vector<8x256xi32> to vector<8x256xf32>
    %c0_1 = arith.constant 0 : index
    %c0_2 = arith.constant 0 : index
    %51 = vector.load %arg1[%c0_1, %c0_2] : memref<256x128xf32, #tpu.memory_space<vmem>>, vector<256x128xf32>
    %cst = arith.constant dense<0.000000e+00> : vector<8x128xf32>
    %52 = tpu.matmul %50, %51, %cst {dimension_numbers = #tpu.dot_dimension_numbers<[1], [0], [0], [1], [0, 0, 1, 1], [], []>} : vector<8x256xf32>, vector<256x128xf32>, vector<8x128xf32> -> vector<8x128xf32>
    %c0_3 = arith.constant 0 : index
    %c0_4 = arith.constant 0 : index
    %53 = vector.load %arg2[%c0_3, %c0_4] : memref<1x128xf32, #tpu.memory_space<vmem>>, vector<1x128xf32>
    %54 = vector.broadcast %53 : vector<1x128xf32> to vector<8x128xf32>
    %55 = arith.addf %52, %54 : vector<8x128xf32>
    %cst_5 = arith.constant 0.000000e+00 : f32
    %56 = vector.broadcast %cst_5 : f32 to vector<8x128xf32>
    %57 = arith.maximumf %55, %56 : vector<8x128xf32>
    %c0_6 = arith.constant 0 : index
    %c0_7 = arith.constant 0 : index
    %58 = vector.load %arg3[%c0_6, %c0_7] : memref<128x128xf32, #tpu.memory_space<vmem>>, vector<128x128xf32>
    %cst_8 = arith.constant dense<0.000000e+00> : vector<8x128xf32>
    %59 = tpu.matmul %57, %58, %cst_8 {dimension_numbers = #tpu.dot_dimension_numbers<[1], [0], [0], [1], [0, 0, 1, 1], [], []>} : vector<8x128xf32>, vector<128x128xf32>, vector<8x128xf32> -> vector<8x128xf32>
    %c0_9 = arith.constant 0 : index
    %c0_10 = arith.constant 0 : index
    %60 = vector.load %arg4[%c0_9, %c0_10] : memref<1x128xf32, #tpu.memory_space<vmem>>, vector<1x128xf32>
    %61 = vector.broadcast %60 : vector<1x128xf32> to vector<8x128xf32>
    %62 = arith.addf %59, %61 : vector<8x128xf32>
    %c0_11 = arith.constant 0 : index
    %c0_12 = arith.constant 0 : index
    %63 = vector.load %arg5[%c0_11, %c0_12] : memref<8x128xf32, #tpu.memory_space<vmem>>, vector<8x128xf32>
    tpu.vector_store %arg5[%c0_11, %c0_12], %62 {strides = array<i32>} : memref<8x128xf32, #tpu.memory_space<vmem>>, vector<8x128xf32>,
    return
  }
}

</mosaic_0001>

<bundles_post_ra>
// kernel: mlp_forward.1
= control target key start
LH: loop header
LB: loop body
LE: loop exit
PB: predicated region body
PF: predicated region fallthrough
CT: control target
= control target key end

     0   :  { %10 = vsyncpa [#allocation3], 0  ;;  %s645_s0 = inlined_call_operand.vmem [shape: s32[8,8], index: 0, kind: input, shape index: {}]   ;;  %s646_s1 = inlined_call_operand.hbm [shape: f32[256,128], index: 1, kind: input, shape index: {}]   ;;  %s647_s2 = inlined_call_operand.vmem [shape: f32[1,128], index: 2, kind: input, shape index: {}]   ;;  %s648_s3 = inlined_call_operand.hbm [shape: f32[128,128], index: 3, kind: input, shape index: {}]   ;;  %s649_s4 = inlined_call_operand.vmem [shape: f32[1,128], index: 4, kind: input, shape index: {}]   ;;  %s650_s5 = inlined_call_operand.vmem [shape: f32[8,128], index: 5, kind: output, shape index: {}]  }
   0x1   :  { %11 = vsyncpa [#allocation5], 0  ;;  %s546_s18 = smov [#allocation2]   ;;  %s498_s22 = scalar_lea.hbm %s646_s1, 4096 }
   0x2   :  { %s19_s19 = sshll.u32 %s546_s18, 4  ;;  %p499_p0 = scmp.ne.s32.totalorder %s646_s1, %s498_s22  ;;  %s20_s19 = int_to_ptr.vmem [resolvable:$true] %s19_s19 }
   0x3   :  { %p502_p1 = scmp.lt.u32.totalorder %s498_s22, %s646_s1 }
   0x5   :  { %p504_p2 = pnand %p502_p1, %p499_p0 }
   0x7   :  { %507 = shalt.err (!%p504_p2)
}
   0x8   :  { %s508_s27 = scalar_lea.vmem %s20_s19, 4096  ;;  %p513_p4 = scmp.lt.s32.totalorder %s20_s19, %s20_s19 }
   0x9   :  { %p509_p3 = scmp.ne.s32.totalorder %s20_s19, %s508_s27  ;;  %p514_p5 = scmp.lt.s32.totalorder %s508_s27, %s508_s27 }
   0xb   :  { %p515_p6 = por %p514_p5, %p513_p4 }
   0xd   :  { %p516_p7 = pnand %p515_p6, %p509_p3 }
   0xf   :  { %519 = shalt.err (!%p516_p7)
}
  0x10   :  { %s547_s28 = smov 128   ;;  %s548_s29 = smov 8  }
  0x11   :  { %25 = dma.hbm_to_vmem [thread:$0]  %s646_s1, 4096, %s20_s19, [#allocation3], %s547_s28, %s547_s28, %s548_s29  }
  0x12   :  { %s549_s7 = smov [#allocation4]   ;;  %s520_s11 = scalar_lea.hbm %s648_s3, 2048 }
  0x13   :  { %s33_s8 = sshll.u32 %s549_s7, 4  ;;  %p521_p8 = scmp.ne.s32.totalorder %s648_s3, %s520_s11  ;;  %s34_s8 = int_to_ptr.vmem [resolvable:$true] %s33_s8 }
  0x14   :  { %p524_p9 = scmp.lt.u32.totalorder %s520_s11, %s648_s3 }
  0x16   :  { %p526_p10 = pnand %p524_p9, %p521_p8 }
  0x18   :  { %529 = shalt.err (!%p526_p10)
}
  0x19   :  { %s530_s16 = scalar_lea.vmem %s34_s8, 2048  ;;  %p535_p12 = scmp.lt.s32.totalorder %s34_s8, %s34_s8 }
  0x1a   :  { %p531_p11 = scmp.ne.s32.totalorder %s34_s8, %s530_s16  ;;  %p536_p13 = scmp.lt.s32.totalorder %s530_s16, %s530_s16 }
  0x1c   :  { %p537_p0 = por %p536_p13, %p535_p12 }
  0x1e   :  { %p538_p1 = pnand %p537_p0, %p531_p11 }
  0x20   :  { %541 = shalt.err (!%p538_p1)
}
  0x21   :  { %39 = dma.hbm_to_vmem [thread:$0]  %s648_s3, 2048, %s34_s8, [#allocation5], %s547_s28, %s547_s28, %s548_s29  }
  0x22   :  { %542 = dma.done.wait [#allocation3], 4096  }
  0x23   :  { %543 = vsyncadd [#allocation3], 4294963200 }
  0x24   :  { %544 = dma.done.wait [#allocation5], 2048  }
  0x25   :  { %545 = vsyncadd [#allocation5], 4294965248  ;;  %v550_v0 = vmov 0   ;;  %v551_v1 = vmov 2   ;;  %v618_v2 = vld [vmem:[%s645_s0] sm:$0xff]  ;;  %v134_v4 = vld [vmem:[#allocation2 + $0x88] sm:$0xff] }
  0x26   :  { %489 = vset.pattern.permute.xlu0 %v550_v0  ;;  %491 = vset.pattern.permute.xlu1 %v551_v1  ;;  %v133_v3 = vld [vmem:[#allocation2 + $0x80] sm:$0xff]  ;;  %v65_v5 = vadd.s32 64, %v618_v2  ;;  %v118_v7 = vld [vmem:[#allocation2 + $0x8] sm:$0xff]  ;;  %v57_v8 = vadd.s32 32, %v618_v2  ;;  %v135_v10 = vld [vmem:[#allocation2 + $0x90] sm:$0xff]  ;;  %v73_v18 = vadd.s32 96, %v618_v2 }
  0x27   :  { %53 = vperm.xlu0 %489, %v618_v2   ;;  %v117_v6 = vld [vmem:[#allocation2] sm:$0xff]  ;;  %v418_v9 = vpack.c.bf16 %v134_v4, %v133_v3  ;;  %v136_v11 = vld [vmem:[#allocation2 + $0x98] sm:$0xff]  ;;  %v119_v12 = vld [vmem:[#allocation2 + $0x10] sm:$0xff]  ;;  %v552_v19 = vmov 1   ;;  %v553_v24 = vmov 3   ;;  %v89_v25 = vadd.s32 160, %v618_v2 }
  0x28   :  { %67 = vperm.xlu1 %491, %v65_v5   ;;  %v420_v13 = vpack.c.bf16 %v118_v7, %v117_v6  ;;  %v422_v14 = vpack.c.bf16 %v136_v11, %v135_v10  ;;  %v120_v15 = vld [vmem:[#allocation2 + $0x18] sm:$0xff]  ;;  %v137_v16 = vld [vmem:[#allocation2 + $0xa0] sm:$0xff]  ;;  %v138_v17 = vld [vmem:[#allocation2 + $0xa8] sm:$0xff]  ;;  %v81_v28 = vadd.s32 128, %v618_v2  ;;  %v554_v30 = vmov 5  }
  0x29   :  { %419 = vmatprep.subr.bf16.mxu0 %v418_v9  ;;  %v424_v20 = vpack.c.bf16 %v120_v15, %v119_v12  ;;  %v426_v21 = vpack.c.bf16 %v138_v17, %v137_v16  ;;  %v121_v22 = vld [vmem:[#allocation2 + $0x20] sm:$0xff]  ;;  %v122_v23 = vld [vmem:[#allocation2 + $0x28] sm:$0xff]  ;;  %v139_v26 = vld [vmem:[#allocation2 + $0xb0] sm:$0xff]  ;;  %v555_v36 = vmov 4   ;;  %v97_v38 = vadd.s32 192, %v618_v2 }
  0x2a   :  { %421 = vmatpush3.bf16.msra.mxu0 %v420_v13  ;;  %v140_v27 = vld [vmem:[#allocation2 + $0xb8] sm:$0xff]  ;;  %v428_v29 = vpack.c.bf16 %v122_v23, %v121_v22  ;;  %v123_v32 = vld [vmem:[#allocation2 + $0x30] sm:$0xff]  ;;  %v141_v34 = vld [vmem:[#allocation2 + $0xc0] sm:$0xff]  ;;  %v556_v44 = vmov 7   ;;  %v557_v45 = vmov 6   ;;  %v105_v50 = vadd.s32 224, %v618_v2 }
  0x2b   :  { %490 = vset.pattern.permute.xlu0 %v552_v19  ;;  %423 = vmatprep.subr.bf16.mxu0 %v422_v14  ;;  %v430_v31 = vpack.c.bf16 %v140_v27, %v139_v26  ;;  %v124_v33 = vld [vmem:[#allocation2 + $0x38] sm:$0xff]  ;;  %v142_v35 = vld [vmem:[#allocation2 + $0xc8] sm:$0xff]  ;;  %v125_v40 = vld [vmem:[#allocation2 + $0x40] sm:$0xff]  ;;  %v558_v3 = vmov 0.0|0.0   ;;  %v49_v19 = vlaneseq }
  0x2c   :  { %59 = vperm.xlu0 %490, %v57_v8   ;;  %492 = vset.pattern.permute.xlu1 %v553_v24  ;;  %v432_v37 = vpack.c.bf16 %v124_v33, %v123_v32  ;;  %v434_v39 = vpack.c.bf16 %v142_v35, %v141_v34  ;;  %v126_v41 = vld [vmem:[#allocation2 + $0x48] sm:$0xff]  ;;  %v143_v42 = vld [vmem:[#allocation2 + $0xd0] sm:$0xff]  ;;  %v144_v43 = vld [vmem:[#allocation2 + $0xd8] sm:$0xff] }
  0x2d   :  { %75 = vperm.xlu1 %492, %v73_v18   ;;  %v436_v46 = vpack.c.bf16 %v126_v41, %v125_v40  ;;  %v438_v47 = vpack.c.bf16 %v144_v43, %v143_v42  ;;  %v127_v48 = vld [vmem:[#allocation2 + $0x50] sm:$0xff]  ;;  %v128_v49 = vld [vmem:[#allocation2 + $0x58] sm:$0xff]  ;;  %v145_v51 = vld [vmem:[#allocation2 + $0xe0] sm:$0xff]  ;;  %450 = vmatprep.subr.bf16.mxu1 %v558_v3 }
  0x2e   :  { %425 = vmatpush3.bf16.msra.mxu0 %v424_v20  ;;  %v146_v52 = vld [vmem:[#allocation2 + $0xe8] sm:$0xff]  ;;  %v440_v53 = vpack.c.bf16 %v128_v49, %v127_v48  ;;  %v129_v55 = vld [vmem:[#allocation2 + $0x60] sm:$0xff]  ;;  %v147_v57 = vld [vmem:[#allocation2 + $0xf0] sm:$0xff] }
  0x2f   :  { %427 = vmatprep.subr.bf16.mxu0 %v426_v21  ;;  %v442_v54 = vpack.c.bf16 %v146_v52, %v145_v51  ;;  %v130_v56 = vld [vmem:[#allocation2 + $0x68] sm:$0xff]  ;;  %v148_v58 = vld [vmem:[#allocation2 + $0xf8] sm:$0xff]  ;;  %v131_v61 = vld [vmem:[#allocation2 + $0x70] sm:$0xff]  ;;  %v50_v21 = vand.u32 127, %v49_v19 }
  0x30   :  { %494 = vset.pattern.permute.xlu0 %v554_v30  ;;  %v444_v59 = vpack.c.bf16 %v130_v56, %v129_v55  ;;  %v446_v60 = vpack.c.bf16 %v148_v58, %v147_v57  ;;  %v132_v62 = vld [vmem:[#allocation2 + $0x78] sm:$0xff]  ;;  %v227_v63 = vld [vmem:[#allocation4] sm:$0xff]  ;;  %v228_v0 = vld [vmem:[#allocation4 + $0x8] sm:$0xff]  ;;  %v559_v30 = vmov 0.0  }
  0x31   :  { %91 = vperm.xlu0 %494, %v89_v25   ;;  %493 = vset.pattern.permute.xlu1 %v555_v36  ;;  %v229_v1 = vld [vmem:[#allocation4 + $0x10] sm:$0xff]  ;;  %v448_v2 = vpack.c.bf16 %v132_v62, %v131_v61  ;;  %v451_v4 = vpack.c.bf16 %v228_v0, %v227_v63  ;;  %v230_v5 = vld [vmem:[#allocation4 + $0x18] sm:$0xff]  ;;  %v231_v7 = vld [vmem:[#allocation4 + $0x20] sm:$0xff]  ;;  %v51_v23 = vadd.s32 128, %v50_v21 }
  0x32   :  { %83 = vperm.xlu1 %493, %v81_v28   ;;  %429 = vmatpush3.bf16.msra.mxu0 %v428_v29  ;;  %v454_v6 = vpack.c.bf16 %v230_v5, %v229_v1  ;;  %v232_v8 = vld [vmem:[#allocation4 + $0x28] sm:$0xff]  ;;  %v233_v10 = vld [vmem:[#allocation4 + $0x30] sm:$0xff]  ;;  %v234_v11 = vld [vmem:[#allocation4 + $0x38] sm:$0xff] }
  0x33   :  { %431 = vmatprep.subr.bf16.mxu0 %v430_v31  ;;  %452 = vmatpush3.bf16.msra.mxu1 %v451_v4  ;;  %v457_v9 = vpack.c.bf16 %v232_v8, %v231_v7  ;;  %v460_v12 = vpack.c.bf16 %v234_v11, %v233_v10  ;;  %v235_v13 = vld [vmem:[#allocation4 + $0x40] sm:$0xff]  ;;  %v236_v14 = vld [vmem:[#allocation4 + $0x48] sm:$0xff]  ;;  %v237_v16 = vld [vmem:[#allocation4 + $0x50] sm:$0xff] }
  0x34   :  { %453 = vmatprep.subr.bf16.mxu1 %v558_v3  ;;  %v463_v15 = vpack.c.bf16 %v236_v14, %v235_v13  ;;  %v238_v17 = vld [vmem:[#allocation4 + $0x58] sm:$0xff]  ;;  %v239_v33 = vld [vmem:[#allocation4 + $0x60] sm:$0xff]  ;;  %v240_v34 = vld [vmem:[#allocation4 + $0x68] sm:$0xff] }
  0x35   :  { %497 = vset.pattern.permute.xlu0 %v556_v44  ;;  %v466_v18 = vpack.c.bf16 %v238_v17, %v237_v16  ;;  %v469_v35 = vpack.c.bf16 %v240_v34, %v239_v33  ;;  %v241_v36 = vld [vmem:[#allocation4 + $0x70] sm:$0xff]  ;;  %v329_v40 = vld [vmem:[%s647_s2] ss:$0 sm:$0xff] }
  0x36   :  { %495 = vset.pattern.permute.xlu1 %v557_v45  ;;  %433 = vmatpush3.bf16.msra.mxu0 %v432_v37  ;;  %v242_v37 = vld [vmem:[#allocation4 + $0x78] sm:$0xff]  ;;  %v330_v45 = vld [vmem:[%s649_s4] ss:$0 sm:$0xff] }
  0x37   :  { %99 = vperm.xlu1 %495, %v97_v38   ;;  %435 = vmatprep.subr.bf16.mxu0 %v434_v39  ;;  %v472_v38 = vpack.c.bf16 %v242_v37, %v241_v36 }
  0x38   :  { %455 = vmatpush3.bf16.msra.mxu1 %v454_v6 }
  0x39   :  { %456 = vmatprep.subr.bf16.mxu1 %v558_v3 }
  0x3a   :  { %437 = vmatpush3.bf16.msra.mxu0 %v436_v46 }
  0x3b   :  { %496 = vset.pattern.permute.xlu1 %v556_v44  ;;  %439 = vmatprep.subr.bf16.mxu0 %v438_v47 }
  0x3c   :  { %107 = vperm.xlu1 %496, %v105_v50   ;;  %458 = vmatpush3.bf16.msra.mxu1 %v457_v9 }
  0x3d   :  { %459 = vmatprep.subr.bf16.mxu1 %v558_v3 }
  0x3e   :  { %441 = vmatpush3.bf16.msra.mxu0 %v440_v53 }
  0x3f   :  { %443 = vmatprep.subr.bf16.mxu0 %v442_v54 }
  0x40   :  { %461 = vmatpush3.bf16.msra.mxu1 %v460_v12 }
  0x41   :  { %462 = vmatprep.subr.bf16.mxu1 %v558_v3 }
  0x42   :  { %445 = vmatpush3.bf16.msra.mxu0 %v444_v59 }
  0x43   :  { %447 = vmatprep.subr.bf16.mxu0 %v446_v60 }
  0x44   :  { %464 = vmatpush3.bf16.msra.mxu1 %v463_v15 }
  0x45   :  { %465 = vmatprep.subr.bf16.mxu1 %v558_v3 }
  0x46   :  { %449 = vmatpush3.bf16.msra.mxu0 %v448_v2 }
  0x48   :  { %467 = vmatpush3.bf16.msra.mxu1 %v466_v18 }
  0x49   :  { %468 = vmatprep.subr.bf16.mxu1 %v558_v3 }
  0x4c   :  { %470 = vmatpush3.bf16.msra.mxu1 %v469_v35 }
  0x4d   :  { %471 = vmatprep.subr.bf16.mxu1 %v558_v3 }
  0x50   :  { %473 = vmatpush3.bf16.msra.mxu1 %v472_v38 }
  0xa6   :  { %v54_v20 = vpop.permute.xlu0 %53 }
  0xa7   :  { %v68_v22 = vpop.permute.xlu1 %67  ;;  %vm55_vm0 = vcmp.eq.s32.totalorder %v50_v21, %v54_v20  ;;  %vm56_vm2 = vcmp.eq.s32.totalorder %v51_v23, %v54_v20 }
  0xa8   :  { %vm69_vm6 = vcmp.eq.s32.totalorder %v50_v21, %v68_v22  ;;  %vm70_vm7 = vcmp.eq.s32.totalorder %v51_v23, %v68_v22 }
  0xab   :  { %v60_v24 = vpop.permute.xlu0 %59 }
  0xac   :  { %vm61_vm1 = vcmp.eq.s32.totalorder %v50_v21, %v60_v24  ;;  %vm62_vm3 = vcmp.eq.s32.totalorder %v51_v23, %v60_v24  ;;  %v76_v25 = vpop.permute.xlu1 %75 }
  0xad   :  { %vm63_vm4 = vmor %vm55_vm0, %vm61_vm1  ;;  %vm77_vm9 = vcmp.eq.s32.totalorder %v50_v21, %v76_v25  ;;  %vm78_vm11 = vcmp.eq.s32.totalorder %v51_v23, %v76_v25 }
  0xae   :  { %vm64_vm5 = vmor %vm56_vm2, %vm62_vm3 }
  0xaf   :  { %vm71_vm8 = vmor %vm63_vm4, %vm69_vm6 }
  0xb0   :  { %vm72_vm10 = vmor %vm64_vm5, %vm70_vm7  ;;  %v92_v27 = vpop.permute.xlu0 %91 }
  0xb1   :  { %v84_v26 = vpop.permute.xlu1 %83  ;;  %vm79_vm13 = vmor %vm71_vm8, %vm77_vm9  ;;  %vm93_vm1 = vcmp.eq.s32.totalorder %v50_v21, %v92_v27  ;;  %vm94_vm3 = vcmp.eq.s32.totalorder %v51_v23, %v92_v27 }
  0xb2   :  { %vm85_vm12 = vcmp.eq.s32.totalorder %v50_v21, %v84_v26  ;;  %vm86_vm14 = vcmp.eq.s32.totalorder %v51_v23, %v84_v26  ;;  %vm80_vm15 = vmor %vm72_vm10, %vm78_vm11 }
  0xb3   :  { %vm87_vm0 = vmor %vm79_vm13, %vm85_vm12 }
  0xb4   :  { %vm88_vm2 = vmor %vm80_vm15, %vm86_vm14  ;;  %vm560_vm14 = vmmov 0  }
  0xb5   :  { %vm95_vm6 = vmor %vm87_vm0, %vm93_vm1  ;;  %415 = vmatprep.mubr.msk.f32.mxu1 %vm560_vm14, %v559_v30 }
  0xb6   :  { %v100_v28 = vpop.permute.xlu1 %99  ;;  %vm96_vm7 = vmor %vm88_vm2, %vm94_vm3 }
  0xb7   :  { %vm101_vm4 = vcmp.eq.s32.totalorder %v50_v21, %v100_v28  ;;  %vm102_vm5 = vcmp.eq.s32.totalorder %v51_v23, %v100_v28 }
  0xb8   :  { %vm103_vm8 = vmor %vm95_vm6, %vm101_vm4 }
  0xb9   :  { %vm104_vm11 = vmor %vm96_vm7, %vm102_vm5 }
  0xbb   :  { %v108_v29 = vpop.permute.xlu1 %107 }
  0xbc   :  { %vm109_vm9 = vcmp.eq.s32.totalorder %v50_v21, %v108_v29  ;;  %vm110_vm10 = vcmp.eq.s32.totalorder %v51_v23, %v108_v29 }
  0xbd   :  { %vm111_vm12 = vmor %vm103_vm8, %vm109_vm9 }
  0xbe   :  { %vm112_vm13 = vmor %vm104_vm11, %vm110_vm10  ;;  %v327_v31 = vsel %vm111_vm12, 1.0, %v559_v30 }
  0xbf   :  { %v328_v32 = vsel %vm112_vm13, 1.0, %v559_v30 }
  0xc0   :  { %220 = vmatprep.mubr.f32.mxu0 %v328_v32 }
  0xc1   :  { %221 = vmatmul.mubr.f32.vlgmr.msra.gmra.mrb[0].mxu0 %v327_v31 }
 0x194   :  { %v363_v39 = vpop.f32.mrb[0].mxu0 }
 0x195   :  { %v364_v41 = vpop.f32.mrb[1].mxu0 }
 0x196   :  { %v365_v42 = vadd.f32 %v364_v41, %v363_v39 }
 0x198   :  { %v223_v43 = vadd.f32 %v365_v42, %v329_v40 }
 0x19a   :  { %v226_v44 = vmax.f32 %v223_v43, 0.0 }
 0x19c   :  { %416 = vmatmul.mubr.f32.vlgmr.msra.gmra.mrb[0].mxu1 %v226_v44 }
 0x26f   :  { %v316_v46 = vpop.f32.mrb[0].mxu1 }
 0x270   :  { %v317_v47 = vadd.f32 %v330_v45, %v316_v46  ;;  %v417_v48 = vpop.f32.mrb[1].mxu1 }
 0x272   :  { %320 = vst [vmem:[%s650_s5] sm:$0xff] %v317_v47 }
 0x273   :  { %325 = vsyncpa [#allocation3], 1 }
 0x274   :  { %326 = vsyncpa [#allocation5], 1 }

</bundles_post_ra>
